<compile_context>
chip_gen: v5e
topology: v5e:2x2
jax: 0.10.0
libtpu: 0.0.40
codegen_flags: <defaults>
</compile_context>

<pallas_src>
from functools import partial

import jax
import jax.numpy as jnp
from jax.experimental import pallas as pl
from jax.experimental.pallas import tpu as pltpu

_LANES = 128
_SUBLANES = 8
_MAX_ROW_TILE = 2048           # 2048 x 128 x 4 B = 1 MiB per output buffer
_TARGET_TILE_BYTES = 1 << 20   # ~1 MiB per output buffer on the logical-write path
_PALLAS_MIN_BYTES = 64 * 1024  # below this, a fused XLA constant beats any launch


def _round_up(x, m):
    return ((x + m - 1) // m) * m


def _fill_kernel(bias_ref, o_ref):
    # bias_ref: (1,) float32 in SMEM.  o_ref: VMEM output tile (2D slab or 3D block).
    c = bias_ref[0] + jnp.float32(1.0)                        # single scalar add
    o_ref[...] = jnp.full(o_ref.shape, c, dtype=o_ref.dtype)  # pure broadcast store


@partial(jax.jit, static_argnums=(1,))
def _fill_lane_dense(bias, out_shape):
    """total % 1024 == 0: exact (total//128, 128) lane-dense slab, no padding."""
    bs, p, d = out_shape
    total = bs * p * d
    rows = total // _LANES                       # multiple of 8 by construction
    grid_n = pl.cdiv(rows, _MAX_ROW_TILE)        # grid first ...
    row_tile = _round_up(pl.cdiv(rows, grid_n), _SUBLANES)   # ... then shrink tile
    grid_n = pl.cdiv(rows, row_tile)
    out_bytes = rows * _LANES * 4
    slab = pl.pallas_call(
        _fill_kernel,
        out_shape=jax.ShapeDtypeStruct((rows, _LANES), jnp.float32),
        grid_spec=pltpu.PrefetchScalarGridSpec(
            num_scalar_prefetch=0,
            grid=(grid_n,),
            in_specs=[pl.BlockSpec(memory_space=pltpu.MemorySpace.SMEM)],
            out_specs=pl.BlockSpec((row_tile, _LANES), lambda i: (i, 0)),
        ),
        compiler_params=pltpu.CompilerParams(dimension_semantics=("parallel",)),
        cost_estimate=pl.CostEstimate(flops=0, transcendentals=0,
                                      bytes_accessed=out_bytes),
    )(bias)
    # Exact-size slab: row-major -> row-major reshape, a bitcast under jit
    # (the old padded slab + [:total] slice copy is eliminated).
    return slab.reshape(out_shape)


@partial(jax.jit, static_argnums=(1,))
def _fill_logical(bias, out_shape):
    """General case: write the logical (bs, p, d) output directly, zero padding."""
    bs, p, d = out_shape
    row_bytes = p * d * 4
    bs_tile = min(bs, max(1, _TARGET_TILE_BYTES // row_bytes))
    grid_n = pl.cdiv(bs, bs_tile)                # grid first ...
    bs_tile = pl.cdiv(bs, grid_n)                # ... then shrink tile (bounded waste)
    grid_n = pl.cdiv(bs, bs_tile)
    out_bytes = bs * row_bytes
    return pl.pallas_call(
        _fill_kernel,
        out_shape=jax.ShapeDtypeStruct((bs, p, d), jnp.float32),
        grid_spec=pltpu.PrefetchScalarGridSpec(
            num_scalar_prefetch=0,
            grid=(grid_n,),
            in_specs=[pl.BlockSpec(memory_space=pltpu.MemorySpace.SMEM)],
            # Full last-two-dims block satisfies the (8,128)-or-full-extent rule.
            out_specs=pl.BlockSpec((bs_tile, p, d), lambda i: (i, 0, 0)),
        ),
        compiler_params=pltpu.CompilerParams(dimension_semantics=("parallel",)),
        cost_estimate=pl.CostEstimate(flops=0, transcendentals=0,
                                      bytes_accessed=out_bytes),
    )(bias)


def trivial_model_forward(batch, bias, *, encoder_length, example_length, output_dim):
    """Pallas implementation of TrivialModel.forward.

    batch: dict of arrays (entries may be None); batch size comes from the first
           non-None entry (dict iteration order), matching the PyTorch module.
    bias:  (1,) float32 parameter.
    """
    t = next(t for t in batch.values() if t is not None)
    bs = int(t.shape[0])
    predict_steps = example_length - encoder_length
    out_shape = (bs, predict_steps, output_dim)
    total = bs * predict_steps * output_dim

    bias = jnp.asarray(bias, jnp.float32).reshape((1,))

    if total * 4 < _PALLAS_MIN_BYTES:
        # Tiny fill: let XLA emit (and fuse) the constant; a kernel launch would
        # be pure overhead here.
        return jnp.full(out_shape, 1.0, jnp.float32) + bias.reshape(())

    if total % (_SUBLANES * _LANES) == 0:
        return _fill_lane_dense(bias, out_shape)
    return _fill_logical(bias, out_shape)


if __name__ == "__main__":
    # Config consistent with the module's __init__.
    encoder_length = 8
    example_length = 16            # -> predict_steps = 8
    quantiles = [0.1, 0.5, 0.9]    # -> output_dim = 3
    output_dim = len(quantiles)
    predict_steps = example_length - encoder_length

    key = jax.random.PRNGKey(0)
    k1, k2 = jax.random.split(key)

    def run_case(bs, bias):
        batch = {
            "target": jax.random.normal(k1, (bs, example_length, output_dim), jnp.float32),
            "weight": None,
            "observed": jax.random.normal(k2, (bs, example_length, 4), jnp.float32),
        }
        out = jax.block_until_ready(
            trivial_model_forward(
                batch, bias,
                encoder_length=encoder_length,
                example_length=example_length,
                output_dim=output_dim,
            )
        )
        expected = jnp.ones((bs, predict_steps, output_dim), jnp.float32) + bias.reshape(())
        assert out.shape == (bs, predict_steps, output_dim)
        assert out.dtype == jnp.float32
        assert jnp.allclose(out, expected)
        return out

    bias0 = jnp.zeros((1,), jnp.float32)           # PyTorch init: zeros(1)
    bias1 = jnp.array([0.25], jnp.float32)         # non-zero bias path

    # 1) Tiny batch (matches the PyTorch example config): XLA shortcut path.
    run_case(2, bias0)
    run_case(2, bias1)
    # 2) Large batch, total % 1024 == 0: lane-dense Pallas slab (192 x 128, 0 padding).
    run_case(1024, bias1)
    # 3) Large-ish batch, total % 1024 != 0: direct logical-write Pallas path.
    run_case(700, bias1)

    # TODO(synk): predict / test_with_last / test_with_previous_window are host-side
    # roll/slice/cat ops on batch dicts, not part of forward; not implemented as kernels.

    print("KERNEL_OK")
</pallas_src>

<mosaic_0001>
module attributes {stable_mosaic.version = 11 : i64} {
  func.func @_fill_kernel(%arg0: i32, %arg1: memref<1xf32, #tpu.memory_space<smem>>, %arg2: memref<192x128xf32, #tpu.memory_space<vmem>>) attributes {dimension_semantics = [#tpu.dimension_semantics<parallel>], iteration_bounds = array<i64: 1>, scalar_prefetch = 0 : i64, scratch_operands = 0 : i64, tpu.core_type = #tpu.core_type<tc>, window_params = [{transform_indices = @transform_0, window_bounds = array<i64: 1>}, {transform_indices = @transform_1, window_bounds = array<i64: 192, 128>}]} {
    %c0 = arith.constant 0 : index
    %0 = memref.load %arg1[%c0] : memref<1xf32, #tpu.memory_space<smem>>
    %cst = arith.constant 1.000000e+00 : f32
    %1 = arith.addf %0, %cst : f32
    %2 = vector.broadcast %1 : f32 to vector<192x128xf32>
    %c0_0 = arith.constant 0 : index
    %c0_1 = arith.constant 0 : index
    %3 = vector.load %arg2[%c0_0, %c0_1] : memref<192x128xf32, #tpu.memory_space<vmem>>, vector<192x128xf32>
    tpu.vector_store %arg2[%c0_0, %c0_1], %2 {strides = array<i32>} : memref<192x128xf32, #tpu.memory_space<vmem>>, vector<192x128xf32>,
    return
  }
  func.func @transform_0(%arg0: i32) -> i32 {
    %c0_i32 = arith.constant 0 : i32
    %c0_i32_0 = arith.constant 0 : i32
    return %c0_i32 : i32
  }
  func.func @transform_1(%arg0: i32) -> (i32, i32) {
    %c0_i32 = arith.constant 0 : i32
    %c0_i32_0 = arith.constant 0 : i32
    return %arg0, %c0_i32 : i32, i32
  }
}

</mosaic_0001>

<bundles_post_ra>
// kernel: _fill_lane_dense.1
= control target key start
LH: loop header
LB: loop body
LE: loop exit
PB: predicated region body
PF: predicated region fallthrough
CT: control target
= control target key end

     0   :  { %s125_s0 = inlined_call_operand.<no memory space> [shape: f32[1], index: 0, kind: input, shape index: {}]   ;;  %s126_s1 = inlined_call_operand.vmem [shape: f32[192,128], index: 1, kind: output, shape index: {}]  }
   0x1   :  { %s10_s8 = sadd.f32 1.0, %s125_s0 }
   0x3   :  { %v11_v0 = vstv %s10_s8 }
   0x4   :  { %12 = vst [vmem:[%s126_s1] sm:$0xff] %v11_v0 }
   0x5   :  { %13 = vst [vmem:[%s126_s1 + $0x8] sm:$0xff] %v11_v0 }
   0x6   :  { %14 = vst [vmem:[%s126_s1 + $0x10] sm:$0xff] %v11_v0 }
   0x7   :  { %15 = vst [vmem:[%s126_s1 + $0x18] sm:$0xff] %v11_v0 }
   0x8   :  { %16 = vst [vmem:[%s126_s1 + $0x20] sm:$0xff] %v11_v0 }
   0x9   :  { %17 = vst [vmem:[%s126_s1 + $0x28] sm:$0xff] %v11_v0 }
   0xa   :  { %18 = vst [vmem:[%s126_s1 + $0x30] sm:$0xff] %v11_v0 }
   0xb   :  { %19 = vst [vmem:[%s126_s1 + $0x38] sm:$0xff] %v11_v0 }
   0xc   :  { %20 = vst [vmem:[%s126_s1 + $0x40] sm:$0xff] %v11_v0 }
   0xd   :  { %21 = vst [vmem:[%s126_s1 + $0x48] sm:$0xff] %v11_v0 }
   0xe   :  { %22 = vst [vmem:[%s126_s1 + $0x50] sm:$0xff] %v11_v0 }
   0xf   :  { %23 = vst [vmem:[%s126_s1 + $0x58] sm:$0xff] %v11_v0 }
  0x10   :  { %24 = vst [vmem:[%s126_s1 + $0x60] sm:$0xff] %v11_v0 }
  0x11   :  { %25 = vst [vmem:[%s126_s1 + $0x68] sm:$0xff] %v11_v0 }
  0x12   :  { %26 = vst [vmem:[%s126_s1 + $0x70] sm:$0xff] %v11_v0 }
  0x13   :  { %27 = vst [vmem:[%s126_s1 + $0x78] sm:$0xff] %v11_v0 }
  0x14   :  { %28 = vst [vmem:[%s126_s1 + $0x80] sm:$0xff] %v11_v0 }
  0x15   :  { %29 = vst [vmem:[%s126_s1 + $0x88] sm:$0xff] %v11_v0 }
  0x16   :  { %30 = vst [vmem:[%s126_s1 + $0x90] sm:$0xff] %v11_v0 }
  0x17   :  { %31 = vst [vmem:[%s126_s1 + $0x98] sm:$0xff] %v11_v0 }
  0x18   :  { %32 = vst [vmem:[%s126_s1 + $0xa0] sm:$0xff] %v11_v0 }
  0x19   :  { %33 = vst [vmem:[%s126_s1 + $0xa8] sm:$0xff] %v11_v0 }
  0x1a   :  { %34 = vst [vmem:[%s126_s1 + $0xb0] sm:$0xff] %v11_v0 }
  0x1b   :  { %35 = vst [vmem:[%s126_s1 + $0xb8] sm:$0xff] %v11_v0 }

</bundles_post_ra>
